<compile_context>
chip_gen: v6e
topology: v6e:2x2x1
jax: 0.10.0
libtpu: 0.0.40
codegen_flags: <defaults>
</compile_context>

<pallas_src>
import jax
import jax.numpy as jnp
from jax.experimental import pallas as pl
from jax.experimental.pallas import tpu as pltpu


# ----------------------------------------------------------------------------
# Model hyper-parameters (small, consistent with the module's construction).
# ----------------------------------------------------------------------------
B         = 2           # batch
B_PAD     = 8           # batch padded to full sublanes
F_IN      = 32          # in_features_FFNN
FFNN_H    = 64          # FFNN hidden units (n_units_l0)
FFNN_OUT  = 32          # FFNN pre-output size (n_units_l1)
C_IN      = 4           # CNN input channels (one-hot DNA)
L         = 16          # CNN sequence length
C_OUT     = 8           # conv out channels
K         = 5           # conv kernel size (valid conv)
L_CONV    = L - K + 1   # 12
POOL      = 2
assert L_CONV % POOL == 0, "even/odd pooling scheme assumes L_CONV is even"
L_POOL    = L_CONV // POOL          # 6
CNN_OUT   = C_OUT * L_POOL          # 48 (flattened CNN pre-output)
POST_H    = 64                      # CONCATNET_n_units_l0
N_CLASSES = 2
PAD_CLS   = 8                       # classes padded to 8 output lanes
SLAB_W    = 128                     # packed parameter slab width (lanes)

# Parameter-slab row offsets (all multiples of 8 -> sublane-tile aligned reads).
R_W1  = 0                     # (32 rows, cols :64)   FFNN layer-0 weight
R_B1  = R_W1 + F_IN           # 32,  (1, :64)
R_W2  = R_B1 + 8              # 40,  (64, :32)        FFNN layer-1 weight
R_B2  = R_W2 + FFNN_H         # 104, (1, :32)
R_WEO = R_B2 + 8              # 112, (64, :96)        merged even|odd Toeplitz conv
R_BEO = R_WEO + C_IN * L      # 176, (1, :96)
R_WPA = R_BEO + 8             # 184, (32, :64)        post wp rows for FFNN features
R_WPB = R_WPA + FFNN_OUT      # 216, (48, :64)        post wp rows for CNN features (permuted)
R_BP  = R_WPB + CNN_OUT       # 264, (1, :64)
R_WFT = R_BP + 8              # 272, (8, :64)         final weight, stored TRANSPOSED
R_BF  = R_WFT + PAD_CLS       # 280, (1, :2)
SLAB_ROWS = R_BF + 8          # 288 rows -> 144 KB slab

_VMEM = pl.BlockSpec(memory_space=pltpu.MemorySpace.VMEM)


# ----------------------------------------------------------------------------
# Single fused kernel: FFNN pre-net + CNN pre-net + concat-equivalent post head.
# Every weight block is read full-128-lane-wide (zeros beyond its true width),
# so padding lanes of every intermediate stay exactly zero through ReLU.
# ----------------------------------------------------------------------------
def _fused_kernel(xf_ref, xc_ref, slab_ref, out_ref):
    xf = xf_ref[...]                                       # (B_PAD, 32)
    xc = xc_ref[...]                                       # (B_PAD, 64)

    # ---- FFNN pre-net: (Linear -> ReLU) x 2 (Dropout = identity) ----
    h = jnp.maximum(
        jnp.dot(xf, slab_ref[R_W1:R_W1 + F_IN, :],
                preferred_element_type=jnp.float32)
        + slab_ref[R_B1:R_B1 + 1, :], 0.0)                 # (B_PAD,128), cols :64 valid
    f = jnp.maximum(
        jnp.dot(h[:, :FFNN_H], slab_ref[R_W2:R_W2 + FFNN_H, :],
                preferred_element_type=jnp.float32)
        + slab_ref[R_B2:R_B2 + 1, :], 0.0)                 # cols :32 valid

    # ---- CNN pre-net: Conv1d as ONE merged even|odd Toeplitz matmul,
    #      fused ReLU + MaxPool1d(2) via max of the two 48-lane halves ----
    conv = jnp.maximum(
        jnp.dot(xc, slab_ref[R_WEO:R_WEO + C_IN * L, :],
                preferred_element_type=jnp.float32)
        + slab_ref[R_BEO:R_BEO + 1, :], 0.0)               # cols :48 even, 48:96 odd
    # max(relu(even), relu(odd)) == relu(max(even, odd)); columns ordered (p, c_out)
    pooled = jnp.maximum(conv[:, :CNN_OUT], conv[:, CNN_OUT:2 * CNN_OUT])   # (B_PAD, 48)

    # ---- post head: concat([f, cnn_flat]) @ wp == f @ wp_a + pooled @ wp_b_perm ----
    p = jnp.maximum(
        jnp.dot(f[:, :FFNN_OUT], slab_ref[R_WPA:R_WPA + FFNN_OUT, :],
                preferred_element_type=jnp.float32)
        + jnp.dot(pooled, slab_ref[R_WPB:R_WPB + CNN_OUT, :],
                  preferred_element_type=jnp.float32)
        + slab_ref[R_BP:R_BP + 1, :], 0.0)                 # cols :64 valid

    # ---- final Linear: weight stored transposed (only 8 slab rows shipped) ----
    wft = slab_ref[R_WFT:R_WFT + PAD_CLS, :]               # (8, 128), rows :2 real
    bf = slab_ref[R_BF:R_BF + 1, :]                        # (1, 128), cols :2 real
    out_ref[...] = (jnp.dot(p, wft.T, preferred_element_type=jnp.float32)
                    + bf[:, :PAD_CLS])                     # (B_PAD, PAD_CLS)


def fused_forward_call(xf_pad, xc_pad, slab):
    return pl.pallas_call(
        _fused_kernel,
        out_shape=jax.ShapeDtypeStruct((B_PAD, PAD_CLS), jnp.float32),
        in_specs=[_VMEM, _VMEM, _VMEM],
        out_specs=_VMEM,
    )(xf_pad, xc_pad, slab)


# ----------------------------------------------------------------------------
# Parameter construction (deterministic, synthetic) + one-time packing of all
# parameters (Toeplitz conv weights, permuted wp_b, transposed wf) into one
# (SLAB_ROWS, 128) f32 slab.
# ----------------------------------------------------------------------------
def init_params(key):
    ks = jax.random.split(key, 10)
    s = 0.05
    return {
        # FFNN pre-net (2 layers)
        "w1": s * jax.random.normal(ks[0], (F_IN, FFNN_H), jnp.float32),
        "b1": s * jax.random.normal(ks[1], (1, FFNN_H), jnp.float32),
        "w2": s * jax.random.normal(ks[2], (FFNN_H, FFNN_OUT), jnp.float32),
        "b2": s * jax.random.normal(ks[3], (1, FFNN_OUT), jnp.float32),
        # CNN pre-net: Conv1d weight in PyTorch layout (C_out, C_in, K)
        "w_conv": s * jax.random.normal(ks[4], (C_OUT, C_IN, K), jnp.float32),
        "b_conv": s * jax.random.normal(ks[5], (1, C_OUT), jnp.float32),
        # post head layer 0 : Linear(FFNN_OUT + CNN_OUT -> POST_H)
        "wp": s * jax.random.normal(ks[6], (FFNN_OUT + CNN_OUT, POST_H), jnp.float32),
        "bp": s * jax.random.normal(ks[7], (1, POST_H), jnp.float32),
        # final Linear(POST_H -> n_classes)
        "wf": s * jax.random.normal(ks[8], (POST_H, N_CLASSES), jnp.float32),
        "bf": s * jax.random.normal(ks[9], (1, N_CLASSES), jnp.float32),
    }


def _toeplitz_conv_weight(w_conv, start):
    """Lowered-conv weight: W[(ci*L+pos), (p*C_OUT+co)] = w_conv[co, ci, pos-(2p+start)]
    when 0 <= pos-(2p+start) < K, else 0.  So x_flat @ W gives the valid conv at
    output positions l = 2p+start (even or odd positions, for the fused maxpool)."""
    pos = jnp.arange(L)[:, None]                          # (L, 1)
    lpos = POOL * jnp.arange(L_POOL)[None, :] + start     # (1, L_POOL)
    k = pos - lpos                                        # (L, L_POOL)
    valid = (k >= 0) & (k < K)
    kc = jnp.clip(k, 0, K - 1)
    wk = w_conv[:, :, kc]                                 # (C_OUT, C_IN, L, L_POOL)
    w4 = jnp.where(valid[None, None, :, :], wk, 0.0)
    # -> (C_IN, L, L_POOL, C_OUT) -> (C_IN*L, L_POOL*C_OUT)
    return jnp.transpose(w4, (1, 2, 3, 0)).reshape(C_IN * L, L_POOL * C_OUT)


def make_kernel_params(params):
    # Merged even|odd Toeplitz conv weight (one MXU push) and matching tiled bias.
    w_even = _toeplitz_conv_weight(params["w_conv"], 0)           # (64, 48)
    w_odd = _toeplitz_conv_weight(params["w_conv"], 1)            # (64, 48)
    w_eo = jnp.concatenate([w_even, w_odd], axis=1)               # (64, 96)
    b_eo = jnp.tile(params["b_conv"], (1, 2 * L_POOL))            # (1, 96)
    # Split wp so "concat then matmul" becomes two matmuls; fold the PyTorch
    # channel-major flatten into wp_b's row order: perm[p*C_OUT+co] = co*L_POOL+p.
    wp_a = params["wp"][:FFNN_OUT]                                # (32, 64)
    wp_b = params["wp"][FFNN_OUT:]                                # (48, 64) rows ordered (co, p)
    perm = (jnp.arange(L_POOL)[:, None]
            + L_POOL * jnp.arange(C_OUT)[None, :]).reshape(-1)
    wp_b_perm = wp_b[perm]                                        # rows ordered (p, co)
    # Final weight stored transposed so it only occupies 8 slab rows.
    wf_t = params["wf"].T                                         # (2, 64)

    slab = jnp.zeros((SLAB_ROWS, SLAB_W), jnp.float32)

    def put(sl, r, block):
        rows, cols = block.shape
        return sl.at[r:r + rows, :cols].set(block)

    slab = put(slab, R_W1, params["w1"])
    slab = put(slab, R_B1, params["b1"])
    slab = put(slab, R_W2, params["w2"])
    slab = put(slab, R_B2, params["b2"])
    slab = put(slab, R_WEO, w_eo)
    slab = put(slab, R_BEO, b_eo)
    slab = put(slab, R_WPA, wp_a)
    slab = put(slab, R_WPB, wp_b_perm)
    slab = put(slab, R_BP, params["bp"])
    slab = put(slab, R_WFT, wf_t)
    slab = put(slab, R_BF, params["bf"])
    return slab


# ----------------------------------------------------------------------------
# Forward pass: pad batch to 8 rows, flatten x_CNN, one fused pallas_call.
# ----------------------------------------------------------------------------
@jax.jit
def forward(x_ffnn, x_cnn, slab):
    b = x_ffnn.shape[0]
    xf_pad = jnp.zeros((B_PAD, F_IN), jnp.float32).at[:b].set(x_ffnn)
    xc_pad = jnp.zeros((B_PAD, C_IN * L), jnp.float32).at[:b].set(
        x_cnn.reshape(b, C_IN * L))                       # contiguous flatten
    logits_pad = fused_forward_call(xf_pad, xc_pad, slab)
    # The PyTorch forward computes a softmax whose result is discarded (typo);
    # the returned value is the pre-softmax logits flattened to 1-D.
    return logits_pad[:b, :N_CLASSES].reshape(-1)


# Pure-JAX reference for a correctness check (built from the original params).
def forward_ref(x_ffnn, x_cnn, params):
    h = jax.nn.relu(x_ffnn @ params["w1"] + params["b1"])
    f = jax.nn.relu(h @ params["w2"] + params["b2"])
    conv = jax.lax.conv_general_dilated(
        x_cnn, params["w_conv"], window_strides=(1,), padding="VALID",
        dimension_numbers=("NCH", "OIH", "NCH")) + params["b_conv"].reshape(1, C_OUT, 1)
    conv = jax.nn.relu(conv)                                          # (B, C_out, L_CONV)
    pooled = jnp.max(conv.reshape(B, C_OUT, L_POOL, POOL), axis=-1)   # (B, C_out, L_pool)
    cnn_flat = pooled.reshape(B, CNN_OUT)                             # channel-major flatten
    cat = jnp.concatenate([f, cnn_flat], axis=1)
    p = jax.nn.relu(cat @ params["wp"] + params["bp"])
    logits = p @ params["wf"] + params["bf"]
    return logits.reshape(-1)


if __name__ == "__main__":
    key = jax.random.PRNGKey(0)
    k_p, k_f, k_c = jax.random.split(key, 3)
    params = init_params(k_p)
    slab = make_kernel_params(params)
    x_ffnn = jax.random.normal(k_f, (B, F_IN), jnp.float32)
    x_cnn = jax.random.normal(k_c, (B, C_IN, L), jnp.float32)

    out = forward(x_ffnn, x_cnn, slab)
    jax.block_until_ready(out)

    ref = forward_ref(x_ffnn, x_cnn, params)
    assert out.shape == (B * N_CLASSES,)
    assert jnp.allclose(out, ref, atol=1e-4, rtol=1e-4), (out, ref)

    print("KERNEL_OK")
</pallas_src>

<mosaic_0001>
module attributes {stable_mosaic.version = 11 : i64} {
  func.func @_fused_kernel(%arg0: memref<8x32xf32, #tpu.memory_space<vmem>>, %arg1: memref<8x64xf32, #tpu.memory_space<vmem>>, %arg2: memref<288x128xf32, #tpu.memory_space<vmem>>, %arg3: memref<8x8xf32, #tpu.memory_space<vmem>>) attributes {dimension_semantics = [], scalar_prefetch = 0 : i64, scratch_operands = 0 : i64, tpu.core_type = #tpu.core_type<tc>} {
    %c0 = arith.constant 0 : index
    %c0_0 = arith.constant 0 : index
    %0 = vector.load %arg0[%c0, %c0_0] : memref<8x32xf32, #tpu.memory_space<vmem>>, vector<8x32xf32>
    %c0_1 = arith.constant 0 : index
    %c0_2 = arith.constant 0 : index
    %1 = vector.load %arg1[%c0_1, %c0_2] : memref<8x64xf32, #tpu.memory_space<vmem>>, vector<8x64xf32>
    %c0_3 = arith.constant 0 : index
    %c0_4 = arith.constant 0 : index
    %2 = vector.load %arg2[%c0_3, %c0_4] : memref<288x128xf32, #tpu.memory_space<vmem>>, vector<32x128xf32>
    %cst = arith.constant dense<0.000000e+00> : vector<8x128xf32>
    %3 = tpu.matmul %0, %2, %cst {dimension_numbers = #tpu.dot_dimension_numbers<[1], [0], [0], [1], [0, 0, 1, 1], [], []>} : vector<8x32xf32>, vector<32x128xf32>, vector<8x128xf32> -> vector<8x128xf32>
    %c32 = arith.constant 32 : index
    %c0_5 = arith.constant 0 : index
    %4 = vector.load %arg2[%c32, %c0_5] : memref<288x128xf32, #tpu.memory_space<vmem>>, vector<1x128xf32>
    %5 = vector.broadcast %4 : vector<1x128xf32> to vector<8x128xf32>
    %6 = arith.addf %3, %5 : vector<8x128xf32>
    %cst_6 = arith.constant 0.000000e+00 : f32
    %7 = vector.broadcast %cst_6 : f32 to vector<8x128xf32>
    %8 = arith.maximumf %6, %7 : vector<8x128xf32>
    %9 = vector.extract_strided_slice %8 {offsets = [0, 0], sizes = [8, 64], strides = [1, 1]} : vector<8x128xf32> to vector<8x64xf32>
    %c40 = arith.constant 40 : index
    %c0_7 = arith.constant 0 : index
    %10 = vector.load %arg2[%c40, %c0_7] : memref<288x128xf32, #tpu.memory_space<vmem>>, vector<64x128xf32>
    %cst_8 = arith.constant dense<0.000000e+00> : vector<8x128xf32>
    %11 = tpu.matmul %9, %10, %cst_8 {dimension_numbers = #tpu.dot_dimension_numbers<[1], [0], [0], [1], [0, 0, 1, 1], [], []>} : vector<8x64xf32>, vector<64x128xf32>, vector<8x128xf32> -> vector<8x128xf32>
    %c104 = arith.constant 104 : index
    %c0_9 = arith.constant 0 : index
    %12 = vector.load %arg2[%c104, %c0_9] : memref<288x128xf32, #tpu.memory_space<vmem>>, vector<1x128xf32>
    %13 = vector.broadcast %12 : vector<1x128xf32> to vector<8x128xf32>
    %14 = arith.addf %11, %13 : vector<8x128xf32>
    %cst_10 = arith.constant 0.000000e+00 : f32
    %15 = vector.broadcast %cst_10 : f32 to vector<8x128xf32>
    %16 = arith.maximumf %14, %15 : vector<8x128xf32>
    %c112 = arith.constant 112 : index
    %c0_11 = arith.constant 0 : index
    %17 = vector.load %arg2[%c112, %c0_11] : memref<288x128xf32, #tpu.memory_space<vmem>>, vector<64x128xf32>
    %cst_12 = arith.constant dense<0.000000e+00> : vector<8x128xf32>
    %18 = tpu.matmul %1, %17, %cst_12 {dimension_numbers = #tpu.dot_dimension_numbers<[1], [0], [0], [1], [0, 0, 1, 1], [], []>} : vector<8x64xf32>, vector<64x128xf32>, vector<8x128xf32> -> vector<8x128xf32>
    %c176 = arith.constant 176 : index
    %c0_13 = arith.constant 0 : index
    %19 = vector.load %arg2[%c176, %c0_13] : memref<288x128xf32, #tpu.memory_space<vmem>>, vector<1x128xf32>
    %20 = vector.broadcast %19 : vector<1x128xf32> to vector<8x128xf32>
    %21 = arith.addf %18, %20 : vector<8x128xf32>
    %cst_14 = arith.constant 0.000000e+00 : f32
    %22 = vector.broadcast %cst_14 : f32 to vector<8x128xf32>
    %23 = arith.maximumf %21, %22 : vector<8x128xf32>
    %24 = vector.extract_strided_slice %23 {offsets = [0, 0], sizes = [8, 48], strides = [1, 1]} : vector<8x128xf32> to vector<8x48xf32>
    %25 = vector.extract_strided_slice %23 {offsets = [0, 48], sizes = [8, 48], strides = [1, 1]} : vector<8x128xf32> to vector<8x48xf32>
    %26 = arith.maximumf %24, %25 : vector<8x48xf32>
    %27 = vector.extract_strided_slice %16 {offsets = [0, 0], sizes = [8, 32], strides = [1, 1]} : vector<8x128xf32> to vector<8x32xf32>
    %c184 = arith.constant 184 : index
    %c0_15 = arith.constant 0 : index
    %28 = vector.load %arg2[%c184, %c0_15] : memref<288x128xf32, #tpu.memory_space<vmem>>, vector<32x128xf32>
    %cst_16 = arith.constant dense<0.000000e+00> : vector<8x128xf32>
    %29 = tpu.matmul %27, %28, %cst_16 {dimension_numbers = #tpu.dot_dimension_numbers<[1], [0], [0], [1], [0, 0, 1, 1], [], []>} : vector<8x32xf32>, vector<32x128xf32>, vector<8x128xf32> -> vector<8x128xf32>
    %c216 = arith.constant 216 : index
    %c0_17 = arith.constant 0 : index
    %30 = vector.load %arg2[%c216, %c0_17] : memref<288x128xf32, #tpu.memory_space<vmem>>, vector<48x128xf32>
    %cst_18 = arith.constant dense<0.000000e+00> : vector<8x128xf32>
    %31 = tpu.matmul %26, %30, %cst_18 {dimension_numbers = #tpu.dot_dimension_numbers<[1], [0], [0], [1], [0, 0, 1, 1], [], []>} : vector<8x48xf32>, vector<48x128xf32>, vector<8x128xf32> -> vector<8x128xf32>
    %32 = arith.addf %29, %31 : vector<8x128xf32>
    %c264 = arith.constant 264 : index
    %c0_19 = arith.constant 0 : index
    %33 = vector.load %arg2[%c264, %c0_19] : memref<288x128xf32, #tpu.memory_space<vmem>>, vector<1x128xf32>
    %34 = vector.broadcast %33 : vector<1x128xf32> to vector<8x128xf32>
    %35 = arith.addf %32, %34 : vector<8x128xf32>
    %cst_20 = arith.constant 0.000000e+00 : f32
    %36 = vector.broadcast %cst_20 : f32 to vector<8x128xf32>
    %37 = arith.maximumf %35, %36 : vector<8x128xf32>
    %c272 = arith.constant 272 : index
    %c0_21 = arith.constant 0 : index
    %38 = vector.load %arg2[%c272, %c0_21] : memref<288x128xf32, #tpu.memory_space<vmem>>, vector<8x128xf32>
    %c280 = arith.constant 280 : index
    %c0_22 = arith.constant 0 : index
    %39 = vector.load %arg2[%c280, %c0_22] : memref<288x128xf32, #tpu.memory_space<vmem>>, vector<1x128xf32>
    %40 = tpu.transpose %38, [1, 0] : vector<8x128xf32> -> vector<128x8xf32>
    %cst_23 = arith.constant dense<0.000000e+00> : vector<8x8xf32>
    %41 = tpu.matmul %37, %40, %cst_23 {dimension_numbers = #tpu.dot_dimension_numbers<[1], [0], [0], [1], [0, 0, 1, 1], [], []>} : vector<8x128xf32>, vector<128x8xf32>, vector<8x8xf32> -> vector<8x8xf32>
    %42 = vector.extract_strided_slice %39 {offsets = [0, 0], sizes = [1, 8], strides = [1, 1]} : vector<1x128xf32> to vector<1x8xf32>
    %43 = vector.broadcast %42 : vector<1x8xf32> to vector<8x8xf32>
    %44 = arith.addf %41, %43 : vector<8x8xf32>
    %c0_24 = arith.constant 0 : index
    %c0_25 = arith.constant 0 : index
    %45 = vector.load %arg3[%c0_24, %c0_25] : memref<8x8xf32, #tpu.memory_space<vmem>>, vector<8x8xf32>
    tpu.vector_store %arg3[%c0_24, %c0_25], %44 {strides = array<i32>} : memref<8x8xf32, #tpu.memory_space<vmem>>, vector<8x8xf32>,
    return
  }
}

</mosaic_0001>

<bundles_post_ra>
// kernel: forward.1
= control target key start
LH: loop header
LB: loop body
LE: loop exit
PB: predicated region body
PF: predicated region fallthrough
CT: control target
= control target key end

     0   :  { %8 = vsyncpa [#allocation3], 0  ;;  %s696_s12 = smov [#allocation2]   ;;  %s781_s0 = inlined_call_operand.vmem [shape: f32[8,32], index: 0, kind: input, shape index: {}]   ;;  %s782_s1 = inlined_call_operand.vmem [shape: f32[8,64], index: 1, kind: input, shape index: {}]   ;;  %s783_s2 = inlined_call_operand.hbm [shape: f32[288,128], index: 2, kind: input, shape index: {}]   ;;  %s784_s3 = inlined_call_operand.vmem [shape: f32[8,8], index: 3, kind: output, shape index: {}]  }
   0x1   :  { %s18_s13 = sshll.u32 %s696_s12, 4  ;;  %s19_s13 = int_to_ptr.vmem [resolvable:$true] %s18_s13 }
   0x2   :  { %s682_s14 = scalar_lea.vmem %s19_s13, 4608  ;;  %p687_p1 = scmp.lt.s32.totalorder %s19_s13, %s19_s13 }
   0x3   :  { %p683_p0 = scmp.ne.s32.totalorder %s19_s13, %s682_s14  ;;  %p688_p2 = scmp.lt.s32.totalorder %s682_s14, %s682_s14 }
   0x5   :  { %p689_p3 = por %p688_p2, %p687_p1 }
   0x7   :  { %p690_p4 = pnand %p689_p3, %p683_p0 }
   0x9   :  { %693 = shalt.err (!%p690_p4)
}
   0xa   :  { %s697_s15 = smov 128   ;;  %s698_s16 = smov 8  }
   0xb   :  { %24 = dma.hbm_to_vmem [thread:$0]  %s783_s2, 4608, %s19_s13, [#allocation3], %s697_s15, %s697_s15, %s698_s16  }
   0xc   :  { %694 = dma.done.wait [#allocation3], 4608  }
   0xd   :  { %695 = vsyncadd [#allocation3], 4294962688  ;;  %v699_v0 = vmov 0.0   ;;  %vm700_vm0 = vmmov 0   ;;  %v33_v1 = vld [vmem:[#allocation2 + $0x18] sm:$0xff]  ;;  %v32_v2 = vld [vmem:[#allocation2 + $0x10] sm:$0xff] }
   0xe   :  { %588 = vmatprep.subr.mxu0 %v699_v0  ;;  %596 = vmatprep.mubr.msk.f32.mxu0 %vm700_vm0, %v699_v0  ;;  %v31_v3 = vld [vmem:[#allocation2 + $0x8] sm:$0xff]  ;;  %v30_v4 = vld [vmem:[#allocation2] sm:$0xff]  ;;  %vm39_vm1 = vcmask 261120   ;;  %v120_v7 = vld [vmem:[#allocation2 + $0x58] sm:$0xff]  ;;  %vm127_vm2 = vcmask 523264   ;;  %vm304_vm3 = vcmask 392192  }
   0xf   :  { %599 = vmatprep.subr.mxu1 %v699_v0  ;;  %615 = vmatprep.mubr.msk.f32.mxu1 %vm700_vm0, %v699_v0  ;;  %v121_v5 = vld [vmem:[#allocation2 + $0x60] sm:$0xff]  ;;  %v209_v8 = vld [vmem:[#allocation2 + $0xa8] sm:$0xff]  ;;  %v119_v10 = vld [vmem:[#allocation2 + $0x50] sm:$0xff]  ;;  %vm534_vm4 = vcmask 64512  }
  0x10   :  { %589 = vmatpush3.msra.mxu0 %v33_v1  ;;  %v28_v6 = vld [vmem:[%s781_s0] sm:$0xff]  ;;  %600 = vmatpush3.msra.mxu1 %v121_v5  ;;  %v207_v11 = vld [vmem:[#allocation2 + $0x98] sm:$0xff]  ;;  %v118_v12 = vld [vmem:[#allocation2 + $0x48] sm:$0xff] }
  0x11   :  { %590 = vmatprep.subr.mxu0 %v699_v0  ;;  %601 = vmatprep.subr.mxu1 %v699_v0  ;;  %v208_v9 = vld [vmem:[#allocation2 + $0xa0] sm:$0xff]  ;;  %v206_v13 = vld [vmem:[#allocation2 + $0x90] sm:$0xff]  ;;  %v205_v15 = vld [vmem:[#allocation2 + $0x88] sm:$0xff] }
  0x12   :  { %591 = vmatpush3.msra.mxu0 %v32_v2  ;;  %602 = vmatpush3.msra.mxu1 %v120_v7  ;;  %v117_v14 = vld [vmem:[#allocation2 + $0x40] sm:$0xff]  ;;  %v203_v17 = vld [vmem:[#allocation2 + $0x78] sm:$0xff]  ;;  %v202_v18 = vld [vmem:[#allocation2 + $0x70] sm:$0xff] }
  0x13   :  { %592 = vmatprep.subr.mxu0 %v699_v0  ;;  %603 = vmatprep.subr.mxu1 %v699_v0  ;;  %v204_v16 = vld [vmem:[#allocation2 + $0x80] sm:$0xff]  ;;  %v116_v20 = vld [vmem:[#allocation2 + $0x38] sm:$0xff]  ;;  %v115_v21 = vld [vmem:[#allocation2 + $0x30] sm:$0xff] }
  0x14   :  { %593 = vmatpush3.msra.mxu0 %v31_v3  ;;  %604 = vmatpush3.msra.mxu1 %v119_v10  ;;  %v29_v19 = vld [vmem:[%s782_s1] sm:$0xff]  ;;  %v114_v22 = vld [vmem:[#allocation2 + $0x28] sm:$0xff]  ;;  %v302_v29 = vld [vmem:[#allocation2 + $0xf8] sm:$0xff]  ;;  %s701_s1 = smov 80  }
  0x15   :  { %594 = vmatprep.subr.mxu0 %v699_v0  ;;  %605 = vmatprep.subr.mxu1 %v699_v0  ;;  %v541_v23 = vld [vmem:[#allocation2 + $0x20] ss:$0 sm:$0xff]  ;;  %v301_v30 = vld [vmem:[#allocation2 + $0xf0] sm:$0xff]  ;;  %v300_v31 = vld [vmem:[#allocation2 + $0xe8] sm:$0xff] }
  0x16   :  { %595 = vmatpush3.msra.mxu0 %v30_v4  ;;  %606 = vmatpush3.msra.mxu1 %v118_v12  ;;  %v303_v28 = vld [vmem:[#allocation2 + $0x100] sm:$0xff]  ;;  %v297_v32 = vld [vmem:[#allocation2 + $0xd0] sm:$0xff]  ;;  %v298_v34 = vld [vmem:[#allocation2 + $0xd8] sm:$0xff] }
  0x17   :  { %597 = vmatmul.mubr.msk.f32.vlgmr.msra.gmra.mxu0 %vm39_vm1, %v28_v6  ;;  %618 = vmatprep.subr.mxu0 %v699_v0  ;;  %v299_v33 = vld [vmem:[#allocation2 + $0xe0] sm:$0xff]  ;;  %v545_v35 = vld [vmem:[#allocation2 + $0xb0] ss:$0 sm:$0xff]  ;;  %v296_v40 = vld [vmem:[#allocation2 + $0xc8] sm:$0xff] }
  0x18   :  { %619 = vmatpush3.msra.mxu0 %v209_v8  ;;  %634 = vmatprep.mubr.msk.f32.mxu0 %vm700_vm0, %v699_v0  ;;  %v295_v41 = vld [vmem:[#allocation2 + $0xc0] sm:$0xff]  ;;  %v294_v42 = vld [vmem:[#allocation2 + $0xb8] sm:$0xff]  ;;  %v543_v45 = vld [vmem:[#allocation2 + $0x68] ss:$0 sm:$0xff] }
  0x19   :  { %620 = vmatprep.subr.mxu0 %v699_v0  ;;  %607 = vmatprep.subr.mxu1 %v699_v0  ;;  %v458_v50 = vld [vmem:[#allocation2 + $0x110] sm:$0xff]  ;;  %v549_v54 = vld [vmem:[#allocation2 + $0x108] ss:$0 sm:$0xff]  ;;  %v550_v59 = vld [vmem:[#allocation2 + $0x118] ss:$0 sm:$0xff] }
  0x1a   :  { %621 = vmatpush3.msra.mxu0 %v208_v9  ;;  %608 = vmatpush3.msra.mxu1 %v117_v14 }
  0x1b   :  { %622 = vmatprep.subr.mxu0 %v699_v0  ;;  %609 = vmatprep.subr.mxu1 %v699_v0 }
  0x1c   :  { %623 = vmatpush3.msra.mxu0 %v207_v11  ;;  %610 = vmatpush3.msra.mxu1 %v116_v20 }
  0x1d   :  { %624 = vmatprep.subr.mxu0 %v699_v0  ;;  %611 = vmatprep.subr.mxu1 %v699_v0 }
  0x1e   :  { %625 = vmatpush3.msra.mxu0 %v206_v13  ;;  %612 = vmatpush3.msra.mxu1 %v115_v21 }
  0x1f   :  { %626 = vmatprep.subr.mxu0 %v699_v0  ;;  %613 = vmatprep.subr.mxu1 %v699_v0 }
  0x20   :  { %627 = vmatpush3.msra.mxu0 %v205_v15  ;;  %614 = vmatpush3.msra.mxu1 %v114_v22 }
  0x21   :  { %628 = vmatprep.subr.mxu0 %v699_v0  ;;  %637 = vmatprep.subr.mxu1 %v699_v0 }
  0x22   :  { %629 = vmatpush3.msra.mxu0 %v204_v16 }
  0x23   :  { %630 = vmatprep.subr.mxu0 %v699_v0 }
  0x24   :  { %631 = vmatpush3.msra.mxu0 %v203_v17 }
  0x25   :  { %632 = vmatprep.subr.mxu0 %v699_v0 }
  0x26   :  { %633 = vmatpush3.msra.mxu0 %v202_v18 }
  0x27   :  { %635 = vmatmul.mubr.msk.f32.vlgmr.msra.gmra.mxu0 %vm127_vm2, %v29_v19  ;;  %652 = vmatprep.subr.mxu0 %v699_v0 }
  0x28   :  { %660 = vmatprep.mubr.msk.f32.mxu0 %vm700_vm0, %v699_v0  ;;  %653 = vmatpush3.msra.mxu0 %v297_v32 }
  0x29   :  { %654 = vmatprep.subr.mxu0 %v699_v0 }
  0x2a   :  { %655 = vmatpush3.msra.mxu0 %v296_v40 }
  0x2b   :  { %656 = vmatprep.subr.mxu0 %v699_v0 }
  0x2c   :  { %657 = vmatpush3.msra.mxu0 %v295_v41 }
  0x2d   :  { %658 = vmatprep.subr.mxu0 %v699_v0 }
  0x2e   :  { %659 = vmatpush3.msra.mxu0 %v294_v42 }
  0xd7   :  { %v109_v24 = vpop.f32.mrf.mxu0 }
  0xd8   :  { %v110_v25 = vadd.f32 %v541_v23, %v109_v24 }
  0xd9   :  { %v598_v26 = vpop.f32.mrf.mxu0 }
  0xda   :  { %v113_v27 = vmax.f32 %v110_v25, 0.0 }
  0xdc   :  { %616 = vmatmul.mubr.msk.f32.vlgmr.msra.gmra.mxu1 %vm127_vm2, %v113_v27 }
  0xdd   :  { %638 = vmatpush3.msra.mxu1 %v303_v28  ;;  %649 = vmatprep.mubr.msk.f32.mxu1 %vm700_vm0, %v699_v0 }
  0xde   :  { %639 = vmatprep.subr.mxu1 %v699_v0 }
  0xdf   :  { %640 = vmatpush3.msra.mxu1 %v302_v29 }
  0xe0   :  { %641 = vmatprep.subr.mxu1 %v699_v0 }
  0xe1   :  { %642 = vmatpush3.msra.mxu1 %v301_v30 }
  0xe2   :  { %643 = vmatprep.subr.mxu1 %v699_v0 }
  0xe3   :  { %644 = vmatpush3.msra.mxu1 %v300_v31 }
  0xe4   :  { %645 = vmatprep.subr.mxu1 %v699_v0 }
  0xe5   :  { %646 = vmatpush3.msra.mxu1 %v299_v33 }
  0xe6   :  { %647 = vmatprep.subr.mxu1 %v699_v0 }
  0xe7   :  { %v284_v36 = vpop.f32.mrf.mxu0  ;;  %648 = vmatpush3.msra.mxu1 %v298_v34 }
  0xe8   :  { %v285_v37 = vadd.f32 %v545_v35, %v284_v36  ;;  %663 = vmatprep.subr.mxu1 %v699_v0 }
  0xe9   :  { %v636_v38 = vpop.f32.mrf.mxu0 }
  0xea   :  { %v288_v39 = vmax.f32 %v285_v37, 0.0 }
  0xec   :  { %290 = vrot.lane.b32.xlu0 %v288_v39, %s701_s1 }
 0x15e   :  { %v291_v43 = vpop.permute.xlu0 %290 }
 0x15f   :  { %v293_v44 = vmax.f32 %v288_v39, %v291_v43 }
 0x161   :  { %650 = vmatmul.mubr.msk.f32.vlgmr.msra.gmra.mxu1 %vm304_vm3, %v293_v44 }
 0x162   :  { %665 = vmatprep.mubr.msk.f32.mxu1 %vm700_vm0, %v699_v0  ;;  %664 = vmatpush3.xpose.msra.mxu1 %v458_v50 }
 0x19c   :  { %v197_v46 = vpop.f32.mrf.mxu1 }
 0x19d   :  { %v198_v47 = vadd.f32 %v543_v45, %v197_v46 }
 0x19e   :  { %v617_v48 = vpop.f32.mrf.mxu1 }
 0x19f   :  { %v201_v49 = vmax.f32 %v198_v47, 0.0 }
 0x1a1   :  { %661 = vmatmul.mubr.msk.f32.vlgmr.msra.gmra.mxu0 %vm39_vm1, %v201_v49 }
 0x221   :  { %v374_v51 = vpop.f32.mrf.mxu1 }
 0x223   :  { %v651_v52 = vpop.f32.mrf.mxu1 }
 0x261   :  { %v447_v53 = vpop.f32.mrf.mxu0 }
 0x262   :  { %v448_v55 = vadd.f32 %v447_v53, %v374_v51 }
 0x263   :  { %v662_v56 = vpop.f32.mrf.mxu0 }
 0x264   :  { %v456_v57 = vadd.f32 %v549_v54, %v448_v55 }
 0x266   :  { %v457_v58 = vmax.f32 %v456_v57, 0.0 }
 0x268   :  { %666 = vmatmul.mubr.f32.vlgmr.msra.gmra.mxu1 %v457_v58 }
 0x328   :  { %v530_v60 = vpop.f32.mrf.mxu1 }
 0x329   :  { %v531_v61 = vadd.f32 %v550_v59, %v530_v60 }
 0x32a   :  { %v667_v62 = vpop.f32.mrf.mxu1 }
 0x32b   :  { %535 = vst.msk [vmem:[%s784_s3] sm:$0xff] %vm534_vm4, %v531_v61 }
 0x32c   :  { %540 = vsyncpa [#allocation3], 1 }

</bundles_post_ra>
